<compile_context>
chip_gen: v5e
topology: v5e:2x2
jax: 0.10.0
libtpu: 0.0.40
codegen_flags: <defaults>
</compile_context>

<pallas_src>
import functools

import jax
import jax.numpy as jnp
from jax.experimental import pallas as pl
from jax.experimental.pallas import tpu as pltpu


def _deconv_block_kernel(z_ref, skip_ref, w_ref, b_ref, a_ref, out_ref, *,
                         K, padding, l_tile, n_tiles):
    """Fused ConvTranspose1d + channel-concat + PReLU for one (batch, L-tile).

    z_ref    : (1, C_in, L_pad)       zero-upsampled & (K-1)-padded input, bf16
    skip_ref : (1, C_skip, l_tile)    skip connection, f32
    w_ref    : (C_out, K*C_in)        flipped taps folded into one contraction, bf16
    b_ref    : (C_out, 1)             bias, f32 (VMEM)
    a_ref    : (1,)                   shared PReLU scalar, f32 (SMEM)
    out_ref  : (1, C_out + C_skip, l_tile)
    """
    win = l_tile + K - 1
    if n_tiles == 1:
        # Demo / small-L path: fully static window slice.
        zw = z_ref[0, :, padding:padding + win]                  # (C_in, win)
    else:
        j = pl.program_id(1)
        t0 = pl.multiple_of(j * l_tile, l_tile)
        zw = z_ref[0, :, pl.ds(padding + t0, win)]               # (C_in, win)

    # Fold K taps into the contraction dim: one (C_out, K*C_in) x
    # (K*C_in, l_tile) bf16 GEMM with f32 accumulation.  The per-tap shifts
    # are small static lane slices of the already-loaded window.
    slab = jnp.concatenate([zw[:, k:k + l_tile] for k in range(K)], axis=0)
    y = jnp.dot(w_ref[...], slab, preferred_element_type=jnp.float32)
    y = y + b_ref[...]                                           # (C_out, l_tile)

    # Concat along channels (sublanes), single PReLU, single full-tile store.
    cat = jnp.concatenate([y, skip_ref[0].astype(jnp.float32)], axis=0)
    a = a_ref[0]                                                 # SMEM scalar
    cat = jnp.where(cat >= 0, cat, a * cat)
    out_ref[0, :, :] = cat.astype(out_ref.dtype)


def _pick_l_tile(L_out):
    """Lane-dense L tile: full L when small, else a >=128-lane divisor.

    Tiles are kept modest (<=1024 lanes of bf16/f32 per tiny channel count) so
    double-buffered input + skip + output blocks fit v7x's 64 MiB VMEM with
    plenty of headroom; set CompilerParams(vmem_limit_bytes=...) if channel
    counts grow enough to need more than the default scoped limit.
    """
    if L_out <= 512:
        return L_out
    for t in (1024, 512, 256, 128):
        if L_out % t == 0:
            return t
    return L_out


def deconv_block_g(x, skip, weight, bias, prelu_a, *, stride, padding,
                   mxu_dtype=jnp.bfloat16):
    """Forward of DeconvBlockG: ConvTranspose1d(x) -> cat([., skip], C) -> PReLU.

    `mxu_dtype` controls the matmul operand precision (bf16 by default for the
    native MXU path; pass jnp.float32 to recover exact f32 semantics).
    """
    N, C_in, L_in = x.shape
    C_in_w, C_out, K = weight.shape
    assert C_in_w == C_in
    L_out = (L_in - 1) * stride - 2 * padding + K
    Ns, C_skip, Ls = skip.shape
    assert Ns == N and Ls == L_out
    out_dtype = x.dtype

    # --- wrapper-side layout prep (pure zero insertion / padding, no FLOPs) --
    xm = x.astype(mxu_dtype)
    if stride == 1:
        up = xm
    else:
        up = jnp.concatenate(
            [xm[..., None],
             jnp.zeros((N, C_in, L_in, stride - 1), mxu_dtype)], axis=-1,
        ).reshape(N, C_in, L_in * stride)[..., : (L_in - 1) * stride + 1]
    z = jnp.pad(up, ((0, 0), (0, 0), (K - 1, K - 1)))
    L_pad = z.shape[-1]

    # Flip taps and fold K into the contraction dim:
    #   w_big[co, k*C_in + ci] = weight[ci, co, K-1-k]     -> (C_out, K*C_in)
    w_big = (jnp.flip(weight, axis=-1).transpose(1, 2, 0)
             .reshape(C_out, K * C_in).astype(mxu_dtype))
    b2d = bias.reshape(C_out, 1).astype(jnp.float32)
    a1 = jnp.asarray(prelu_a, jnp.float32).reshape(1)
    skip_f = skip.astype(jnp.float32)

    l_tile = _pick_l_tile(L_out)
    n_tiles = L_out // l_tile

    kernel = functools.partial(
        _deconv_block_kernel, K=K, padding=padding, l_tile=l_tile,
        n_tiles=n_tiles)

    return pl.pallas_call(
        kernel,
        out_shape=jax.ShapeDtypeStruct((N, C_out + C_skip, L_out), out_dtype),
        grid=(N, n_tiles),
        in_specs=[
            pl.BlockSpec((1, C_in, L_pad), lambda n, j: (n, 0, 0)),
            pl.BlockSpec((1, C_skip, l_tile), lambda n, j: (n, 0, j)),
            pl.BlockSpec((C_out, K * C_in), lambda n, j: (0, 0)),
            pl.BlockSpec((C_out, 1), lambda n, j: (0, 0)),
            pl.BlockSpec(memory_space=pltpu.MemorySpace.SMEM),
        ],
        out_specs=pl.BlockSpec((1, C_out + C_skip, l_tile),
                               lambda n, j: (n, 0, j)),
        compiler_params=pltpu.CompilerParams(
            dimension_semantics=("parallel", "parallel")),
    )(z, skip_f, w_big, b2d, a1)


def _deconv_block_ref(x, skip, weight, bias, prelu_a, *, stride, padding):
    """Pure-JAX f32 reference matching torch ConvTranspose1d + cat + PReLU."""
    N, C_in, L_in = x.shape
    _, C_out, K = weight.shape
    L_full = (L_in - 1) * stride + K
    y = jnp.zeros((N, C_out, L_full), jnp.float32)
    for k in range(K):
        contrib = jnp.einsum("nci,co->noi", x.astype(jnp.float32),
                             weight[:, :, k].astype(jnp.float32))
        y = y.at[:, :, k: k + (L_in - 1) * stride + 1: stride].add(contrib)
    y = y[:, :, padding: L_full - padding] + bias.astype(jnp.float32)[None, :, None]
    cat = jnp.concatenate([y, skip.astype(jnp.float32)], axis=1)
    return jnp.where(cat >= 0, cat, prelu_a * cat)


if __name__ == "__main__":
    # Small shapes consistent with the module:
    # batch=2, in_ch=4, out_ch=4, kernel=4, stride=2, padding=1, length=16
    # -> L_out = 32; skip connection has 4 channels, concatenated output 8.
    N, C_in, C_out, K, stride, padding, L_in, C_skip = 2, 4, 4, 4, 2, 1, 16, 4
    L_out = (L_in - 1) * stride - 2 * padding + K

    key = jax.random.PRNGKey(0)
    kx, ks, kw, kb = jax.random.split(key, 4)
    x = jax.random.normal(kx, (N, C_in, L_in), jnp.float32)
    skip = jax.random.normal(ks, (N, C_skip, L_out), jnp.float32)
    weight = 0.1 * jax.random.normal(kw, (C_in, C_out, K), jnp.float32)
    bias = 0.1 * jax.random.normal(kb, (C_out,), jnp.float32)
    prelu_a = 0.25  # nn.PReLU() default: one shared parameter, init 0.25

    fwd = jax.jit(functools.partial(deconv_block_g, stride=stride, padding=padding))
    out = jax.block_until_ready(fwd(x, skip, weight, bias, prelu_a))

    expected = _deconv_block_ref(x, skip, weight, bias, prelu_a,
                                 stride=stride, padding=padding)
    assert out.shape == (N, C_out + C_skip, L_out)
    # bf16 MXU operands with f32 accumulation -> loose-ish tolerance vs the
    # exact f32 reference (skip/PReLU/bias paths are exact f32).
    max_diff = float(jnp.max(jnp.abs(out - expected)))
    assert jnp.allclose(out, expected, atol=3e-2, rtol=3e-2), max_diff
    print("KERNEL_OK")
</pallas_src>

<mosaic_0001>
module attributes {stable_mosaic.version = 11 : i64} {
  func.func @_deconv_block_kernel(%arg0: i32, %arg1: i32, %arg2: memref<1x4x37xbf16, #tpu.memory_space<vmem>>, %arg3: memref<1x4x32xf32, #tpu.memory_space<vmem>>, %arg4: memref<4x16xbf16, #tpu.memory_space<vmem>>, %arg5: memref<4x1xf32, #tpu.memory_space<vmem>>, %arg6: memref<1xf32, #tpu.memory_space<smem>>, %arg7: memref<1x8x32xf32, #tpu.memory_space<vmem>>) attributes {dimension_semantics = [#tpu.dimension_semantics<parallel>, #tpu.dimension_semantics<parallel>], iteration_bounds = array<i64: 2, 1>, scalar_prefetch = 0 : i64, scratch_operands = 0 : i64, tpu.core_type = #tpu.core_type<tc>, window_params = [{transform_indices = @transform_0, window_bounds = array<i64: 1, 4, 37>}, {transform_indices = @transform_1, window_bounds = array<i64: 1, 4, 32>}, {pipeline_mode = #tpu.pipeline_mode<synchronous>, transform_indices = @transform_2, window_bounds = array<i64: 4, 16>}, {pipeline_mode = #tpu.pipeline_mode<synchronous>, transform_indices = @transform_3, window_bounds = array<i64: 4, 1>}, {transform_indices = @transform_4, window_bounds = array<i64: 1>}, {transform_indices = @transform_5, window_bounds = array<i64: 1, 8, 32>}]} {
    %c0 = arith.constant 0 : index
    %c0_0 = arith.constant 0 : index
    %c1 = arith.constant 1 : index
    %0 = vector.load %arg2[%c0, %c0_0, %c1] : memref<1x4x37xbf16, #tpu.memory_space<vmem>>, vector<1x4x35xbf16>
    %1 = vector.shape_cast %0 : vector<1x4x35xbf16> to vector<4x35xbf16>
    %2 = vector.extract_strided_slice %1 {offsets = [0, 0], sizes = [4, 32], strides = [1, 1]} : vector<4x35xbf16> to vector<4x32xbf16>
    %3 = vector.extract_strided_slice %1 {offsets = [0, 1], sizes = [4, 32], strides = [1, 1]} : vector<4x35xbf16> to vector<4x32xbf16>
    %4 = vector.extract_strided_slice %1 {offsets = [0, 2], sizes = [4, 32], strides = [1, 1]} : vector<4x35xbf16> to vector<4x32xbf16>
    %5 = vector.extract_strided_slice %1 {offsets = [0, 3], sizes = [4, 32], strides = [1, 1]} : vector<4x35xbf16> to vector<4x32xbf16>
    %6 = tpu.concatenate %2, %3, %4, %5 in 0 : vector<4x32xbf16>, vector<4x32xbf16>, vector<4x32xbf16>, vector<4x32xbf16> -> vector<16x32xbf16>
    %c0_1 = arith.constant 0 : index
    %c0_2 = arith.constant 0 : index
    %7 = vector.load %arg4[%c0_1, %c0_2] : memref<4x16xbf16, #tpu.memory_space<vmem>>, vector<4x16xbf16>
    %cst = arith.constant dense<0.000000e+00> : vector<4x32xf32>
    %8 = tpu.matmul %7, %6, %cst {dimension_numbers = #tpu.dot_dimension_numbers<[1], [0], [0], [1], [0, 0, 1, 1], [], []>} : vector<4x16xbf16>, vector<16x32xbf16>, vector<4x32xf32> -> vector<4x32xf32>
    %c0_3 = arith.constant 0 : index
    %c0_4 = arith.constant 0 : index
    %9 = vector.load %arg5[%c0_3, %c0_4] : memref<4x1xf32, #tpu.memory_space<vmem>>, vector<4x1xf32>
    %10 = vector.broadcast %9 : vector<4x1xf32> to vector<4x32xf32>
    %11 = arith.addf %8, %10 : vector<4x32xf32>
    %c0_5 = arith.constant 0 : index
    %c0_6 = arith.constant 0 : index
    %c0_7 = arith.constant 0 : index
    %12 = vector.load %arg3[%c0_5, %c0_6, %c0_7] : memref<1x4x32xf32, #tpu.memory_space<vmem>>, vector<1x4x32xf32>
    %13 = vector.shape_cast %12 : vector<1x4x32xf32> to vector<4x32xf32>
    %14 = tpu.concatenate %11, %13 in 0 : vector<4x32xf32>, vector<4x32xf32> -> vector<8x32xf32>
    %c0_8 = arith.constant 0 : index
    %15 = memref.load %arg6[%c0_8] : memref<1xf32, #tpu.memory_space<smem>>
    %cst_9 = arith.constant 0.000000e+00 : f32
    %16 = vector.broadcast %cst_9 : f32 to vector<8x32xf32>
    %17 = arith.cmpf oge, %14, %16 : vector<8x32xf32>
    %18 = vector.broadcast %15 : f32 to vector<8x32xf32>
    %19 = arith.mulf %18, %14 : vector<8x32xf32>
    %20 = arith.select %17, %14, %19 : vector<8x32xi1>, vector<8x32xf32>
    %c0_10 = arith.constant 0 : index
    %c0_11 = arith.constant 0 : index
    %c0_12 = arith.constant 0 : index
    %21 = vector.load %arg7[%c0_10, %c0_11, %c0_12] : memref<1x8x32xf32, #tpu.memory_space<vmem>>, vector<1x8x32xf32>
    %22 = vector.shape_cast %21 : vector<1x8x32xf32> to vector<8x32xf32>
    %23 = vector.shape_cast %20 : vector<8x32xf32> to vector<1x8x32xf32>
    tpu.vector_store %arg7[%c0_10, %c0_11, %c0_12], %23 {strides = array<i32>} : memref<1x8x32xf32, #tpu.memory_space<vmem>>, vector<1x8x32xf32>,
    return
  }
  func.func @transform_0(%arg0: i32, %arg1: i32) -> (i32, i32, i32) {
    %c0_i32 = arith.constant 0 : i32
    %c0_i32_0 = arith.constant 0 : i32
    %c0_i32_1 = arith.constant 0 : i32
    return %arg0, %c0_i32, %c0_i32_0 : i32, i32, i32
  }
  func.func @transform_1(%arg0: i32, %arg1: i32) -> (i32, i32, i32) {
    %c0_i32 = arith.constant 0 : i32
    %c0_i32_0 = arith.constant 0 : i32
    return %arg0, %c0_i32, %arg1 : i32, i32, i32
  }
  func.func @transform_2(%arg0: i32, %arg1: i32) -> (i32, i32) {
    %c0_i32 = arith.constant 0 : i32
    %c0_i32_0 = arith.constant 0 : i32
    %c0_i32_1 = arith.constant 0 : i32
    return %c0_i32, %c0_i32_0 : i32, i32
  }
  func.func @transform_3(%arg0: i32, %arg1: i32) -> (i32, i32) {
    %c0_i32 = arith.constant 0 : i32
    %c0_i32_0 = arith.constant 0 : i32
    %c0_i32_1 = arith.constant 0 : i32
    return %c0_i32, %c0_i32_0 : i32, i32
  }
  func.func @transform_4(%arg0: i32, %arg1: i32) -> i32 {
    %c0_i32 = arith.constant 0 : i32
    %c0_i32_0 = arith.constant 0 : i32
    return %c0_i32 : i32
  }
  func.func @transform_5(%arg0: i32, %arg1: i32) -> (i32, i32, i32) {
    %c0_i32 = arith.constant 0 : i32
    %c0_i32_0 = arith.constant 0 : i32
    return %arg0, %c0_i32, %arg1 : i32, i32, i32
  }
}

</mosaic_0001>

<bundles_post_ra>
// kernel: deconv_block_g.1
= control target key start
LH: loop header
LB: loop body
LE: loop exit
PB: predicated region body
PF: predicated region fallthrough
CT: control target
= control target key end

     0   :  { %s736_s0 = inlined_call_operand.vmem [shape: bf16[2,4,37], index: 0, kind: input, shape index: {}]   ;;  %s737_s1 = inlined_call_operand.vmem [shape: f32[2,4,32], index: 1, kind: input, shape index: {}]   ;;  %s738_s2 = inlined_call_operand.vmem [shape: bf16[4,16], index: 2, kind: input, shape index: {}]   ;;  %s739_s3 = inlined_call_operand.vmem [shape: f32[4,1], index: 3, kind: input, shape index: {}]   ;;  %s740_s4 = inlined_call_operand.<no memory space> [shape: f32[1], index: 4, kind: input, shape index: {}]   ;;  %s741_s5 = inlined_call_operand.hbm [shape: f32[2,8,32], index: 5, kind: output, shape index: {}]  }
   0x1   :  { %10 = sst [smem:[#allocation2]] %s740_s4 }
   0x2   :  { %11 = vsyncpa [#allocation4], 0 }
   0x3   :  { %13 = vsyncpa [#allocation4 + $0x1], 0  ;;  %s624_s20 = smov 0   ;;  %s626_s21 = smov 0  }
   0x4   :  { %s628_s22 = smov 0   ;;  %s630_s23 = smov 0  }
   0x5   :  { %s632_s24 = smov 0   ;;  %s634_s25 = smov 0  }
   0x6 LB: > { %s433_s4 = sadd.s32 4294967295, %s585_s25   ;;  %s434_s26 = sadd.s32 4294967294, %s585_s25   ;;  %s585_s25 = sphi %s634_s25, %s19_s25   ;;  %s581_s24 = sphi %s632_s24, %s748_s24   ;;  %s577_s23 = sphi %s630_s23, %s747_s23   ;;  %s573_s22 = sphi %s628_s22, %s746_s22   ;;  %s569_s21 = sphi %s626_s21, %s745_s21   ;;  %s565_s20 = sphi %s624_s20, %s744_s20  }
   0x7   : > { %s31_s27 = sadd.s32 1, %s581_s24  ;;  %s157_s28 = sadd.s32 1, %s573_s22 }
   0x8   : > { %p33_p0 = scmp.ge.s32.totalorder %s31_s27, 2  ;;  %p167_p1 = scmp.ne.s32.totalorder %s573_s22, %s569_s21 }
   0x9   : > { %p168_p2 = scmp.eq.s32.totalorder %s433_s4, 1  ;;  %p173_p3 = scmp.ne.s32.totalorder %s569_s21, %s565_s20 }
   0xa   : > { %s750_s27 = smov (%p33_p0, %s31_s27), 0  ;;  %p174_p5 = scmp.eq.s32.totalorder %s434_s26, 1 }
   0xb   : > { %p664_p4 = por %p168_p2, %p167_p1  ;;  %s152_s30 = ssub.s32 %s581_s24, %s750_s27 }
   0xc   : > { %p437_p6 = scmp.ge.s32.totalorder %s585_s25, 1  ;;  %p155_p7 = scmp.eq.s32.totalorder %s152_s30, 0 }
   0xd   : > { %p671_p8 = por %p174_p5, %p173_p3  ;;  %p218_p9 = scmp.lt.s32.totalorder %s585_s25, 3 }
   0xe   : > { %s677_s7 = scalar_select %p155_p7, %s573_s22, %s157_s28  }
   0xf   : > { %p219_p10 = pnand %p437_p6, %p218_p9 }
  0x10   : > { %p252_p11 = scmp.lt.s32.totalorder (!%p219_p10), %s577_s23, 1  ;;  %s587_s13 = smov (!%p219_p10), 127  }
  0x11   : > { %222 = sbr.rel (%p219_p10) target bundleno = 421 (0x1a5), region = 40  ;;  %s588_s14 = smov (!%p219_p10), 126  }
  0x12   : > { %s589_s15 = smov (!%p219_p10), 125   ;;  %s249_s10 = sand.u32 (!%p219_p10), 1, %s569_s21  }
  0x13   : > { %s438_s11 = sshll.u32 (!%p219_p10), %s249_s10, 3  ;;  %s527_s28 = scalar_lea.hbm (!%p219_p10), %s741_s5, 16 }
  0x14   : > { %s251_s16 = scalar_lea.vmem (!%p219_p10), [#allocation3], %s438_s11 }
  0x16   : > { %s681_s8 = scalar_select %p252_p11, %s577_s23, 1  ;;  %vm284_vm0 = vcmask 1041408   ;;  %vm287_vm1 = vcmask 1043456   ;;  %vm290_vm2 = vcmask 1045504   ;;  %v294_v10 = vld [vmem:[%s739_s3] sm:$0xf] }
  0x17   : > { %v590_v11 = vmov 0   ;;  %v293_v13 = vld [vmem:[%s738_s2] sm:$0x3]  ;;  %vm304_vm3 = vcmask 130048   ;;  %vm331_vm5 = vcmask 261120  }
  0x18   : > { %s439_s9 = sshll.u32 %s681_s8, 1  ;;  %505 = vset.pattern.permute.xlu2 %v590_v11  ;;  %506 = vset.pattern.permute.xlu0 %v590_v11  ;;  %s440_s4 = sshll.u32 %s681_s8, 2 }
  0x19   : > { %s255_s12 = scalar_lea.vmem %s736_s0, %s439_s9  ;;  %297 = vperm.xlu2 %505, %v294_v10   ;;  %s262_s30 = scalar_lea.vmem %s737_s1, %s440_s4 }
  0x1a   : > { %v264_v0 = vld [vmem:[%s255_s12] sm:$0x3]  ;;  %s326_s9 = sld [smem:[#allocation2]]  ;;  %s443_s12 = sshll.u32 %s577_s23, 3 }
  0x1b   : > { %267 = vst [vmem:[#allocation1 + $0x1] ss:$4 sm:$0xff] %v264_v0  ;;  %v321_v14 = vld [vmem:[%s262_s30] sm:$0xf]  ;;  %s347_s8 = sshll.u32 %s251_s16, 4  ;;  %s334_s23 = scalar_lea.sflag [#allocation4], %s249_s10  ;;  %s348_s8 = int_to_ptr.vmem [resolvable:$true] %s347_s8 }
  0x1c   : > { %v323_v16 = vrot.slane %v321_v14, 4 }
  0x20   : > { %v328_v19 = vstv %s326_s9 }
  0x22   : > { %v268_v1 = vld.sshfl [vmem:[#allocation1] sm:$0xff pattern:$0x73625140] }
  0x23   : > { %270 = vrot.lane.b32.xlu0 %v268_v1, %s587_s13  ;;  %273 = vst [vmem:[#allocation1 + $0x2] ss:$4 sm:$0xff] %v264_v0 }
  0x2a   : > { %v274_v2 = vld.sshfl [vmem:[#allocation1] sm:$0xff pattern:$0x73625140] }
  0x2b   : > { %276 = vrot.lane.b32.xlu0 %v274_v2, %s588_s14  ;;  %279 = vst [vmem:[#allocation1 + $0x3] ss:$4 sm:$0xff] %v264_v0 }
  0x32   : > { %v280_v3 = vld.sshfl [vmem:[#allocation1] sm:$0xff pattern:$0x73625140] }
  0x33   : > { %282 = vrot.lane.b32.xlu1 %v280_v3, %s589_s15  ;;  %s345_s15 = scalar_lea.hbm %s741_s5, %s443_s12 }
  0x34   : > { %s349_s17 = sshll.u32 %s345_s15, 4  ;;  %s350_s17 = int_to_ptr.hbm [resolvable:$true] %s349_s17 }
  0x35   : > { %s521_s18 = sshra.s32 %s350_s17, 4  ;;  %s522_s18 = int_to_ptr.hbm [resolvable:$true] %s521_s18 }
  0x36   : > { %s523_s19 = scalar_lea.hbm %s522_s18, 8  ;;  %p528_p1 = scmp.lt.s32.totalorder %s522_s18, %s741_s5 }
  0x37   : > { %p524_p12 = scmp.ne.s32.totalorder %s522_s18, %s523_s19  ;;  %p529_p2 = scmp.lt.s32.totalorder %s527_s28, %s523_s19 }
  0x39   : > { %p525_p13 = pnand %p524_p12, %p664_p4  ;;  %p530_p3 = por %p529_p2, %p528_p1 }
  0x3b   : > { %p526_p0 = pneg %p525_p13 }
  0x3d   : > { %p531_p5 = pnand %p530_p3, %p526_p0 }
  0x73   : > { %v298_v15 = vpop.permute.xlu2 %297 }
  0x95   : > { %v271_v4 = vpop.permute.xlu0 %270 }
  0x96   : > { %v286_v5 = vsel %vm284_vm0, %v264_v0, %v271_v4 }
  0x9d   : > { %v277_v6 = vpop.permute.xlu0 %276 }
  0x9e   : > { %v289_v7 = vsel %vm287_vm1, %v286_v5, %v277_v6 }
  0xa5   : > { %v283_v8 = vpop.permute.xlu1 %282 }
  0xa6   : > { %v292_v9 = vsel %vm290_vm2, %v289_v7, %v283_v8 }
  0xa7   : > { %301 = vrot.lane.b32.xlu1 %v292_v9, %s587_s13 }
 0x119   : > { %v302_v12 = vpop.permute.xlu1 %301 }
 0x11a   : > { %315 = vmatpush.bf16.msra.mxu0 %v302_v12 }
 0x11d   : > { %441 = vmatmul.msk.bf16.vlgmr.msra.gmra.mxu0 %vm304_vm3, %v293_v13 }
 0x19a   : > { %v317_v17 = vpop.f32.mrf.mxu0 }
 0x19b   : > { %v318_v18 = vadd.f32 %v317_v17, %v298_v15 }
 0x19d   : > { %v325_v20 = vsel %vm287_vm1, %v318_v18, %v323_v16 }
 0x19e   : > { %vm327_vm4 = vcmp.ge.f32.partialorder %v325_v20, 0.0  ;;  %v329_v21 = vmul.f32 %v328_v19, %v325_v20 }
 0x1a0   : > { %v330_v22 = vsel %vm327_vm4, %v325_v20, %v329_v21 }
 0x1a1   : > { %332 = vst.msk [vmem:[%s251_s16] sm:$0xff] %vm331_vm5, %v330_v22 }
 0x1a2   : > { %v319_v23 = vpop.f32.mrf.mxu0 }
 0x1a3   : > { %534 = shalt.err (!%p531_p5)
}
 0x1a4   : > { %446 = dma.vmem_to_hbm [thread:$0]  (%p664_p4), %s348_s8, 128, %s350_s17, %s334_s23  }
 0x1a5 PF: > { %p452_p6 = scmp.ge.s32.totalorder %s585_s25, 2  ;;  %s361_s10 = sand.u32 1, %s565_s20  }
 0x1a6   : > { %s362_s11 = scalar_lea.sflag [#allocation4], %s361_s10 }
 0x1a7   : > { %p449_p7 = pnand %p452_p6, %p671_p8 }
 0x1a9   : > { %p450_p9 = pneg %p449_p7 }
 0x1ab   : > { %560 = dma.done.wait (%p450_p9), %s362_s11, 128  }
 0x1ac   : > { %562 = vsyncadd (%p450_p9), %s362_s11, 4294967168  ;;  %s19_s25 = sadd.s32 1, %s585_s25   ;;  %s744_s20 = smov %s569_s21 }
 0x1ad   : > { %p16_p10 = scmp.ge.s32.totalorder %s19_s25, 4   ;;  %s745_s21 = smov %s573_s22 }
 0x1ae   : > { %s746_s22 = smov %s677_s7  ;;  %s747_s23 = smov %s581_s24 }
 0x1af   : > { %s748_s24 = smov %s750_s27  ;;  %18 = sbr.rel (!%p16_p10) target bundleno = 6 (0x6), region = 81 }
 0x1b4   :  { %368 = vsyncpa [#allocation4], 1 }
 0x1b5   :  { %370 = vsyncpa [#allocation4 + $0x1], 1 }

</bundles_post_ra>
